<compile_context>
chip_gen: v7x
topology: tpu7x:2x2x1
jax: 0.10.0
libtpu: 0.0.40
codegen_flags: <defaults>
</compile_context>

<pallas_src>
import functools

import jax
import jax.numpy as jnp
from jax import lax
from jax.experimental import pallas as pl
from jax.experimental.pallas import tpu as pltpu


def _ethical_kernel(x_ref, fw_ref, bf_ref, w2_ref, ip_ref, b2_ref, misc_ref, *,
                    num_principles):
    D = x_ref.shape[1]
    x = x_ref[...].astype(jnp.float32)                         # (tb, D)

    # --- single fused MXU push: contract feature dim of x with [W1 ; principles]
    h_full = lax.dot_general(x, fw_ref[...], (((1,), (1,)), ((), ())),
                             preferred_element_type=jnp.float32)   # (tb, D + PN)
    h_full = h_full + bf_ref[...]          # b1 on the scorer half, zeros elsewhere

    # --- ethical scorer: ReLU(Linear(D,D)) -> Linear(D,1) ----------------------
    hidden = jnp.maximum(h_full[:, :D], 0.0)                   # (tb, D)
    score = jnp.sum(hidden * w2_ref[...], axis=-1, keepdims=True) + b2_ref[0]  # (tb, 1)

    # --- cosine similarity: (x . p_i) / (max(|x|,eps) * max(|p_i|,eps)) --------
    # 1/max(|p_i|,eps) is precomputed in the wrapper (ip_ref, zero in pad lanes).
    inv_x = pl.reciprocal(
        jnp.maximum(jnp.sqrt(jnp.sum(x * x, axis=-1, keepdims=True)), 1e-8))
    cos = h_full[:, D:] * inv_x * ip_ref[...]                  # (tb, PN); pad cols == 0

    # --- lane-dense combined output: cols [0:P] cosine, col P the score --------
    lane = lax.broadcasted_iota(jnp.int32, cos.shape, 1)
    misc_ref[...] = jnp.where(lane == num_principles, score, cos)


@functools.partial(jax.jit, static_argnames=("tb",))
def ethical_reasoning_forward(x, principles, w1, b1, w2, b2, *, tb=None):
    """Returns (adjusted_x (B,D), ethical_score (B,), ethical_alignment (B,P))."""
    B, D = x.shape
    P = principles.shape[0]
    if tb is None:
        tb = B if B <= 512 else 512
    assert B % tb == 0
    eps = 1e-8

    # Lane-padded width for the cosine columns, with >=1 spare lane for the score.
    PN = ((P // 128) + 1) * 128

    # Fused weight: rows = [W1 ; principles ; zero pad]; contraction over features.
    # (W1 is kept untransposed — dot_general contracts dim 1 of both operands.)
    fused_w = jnp.concatenate(
        [w1.astype(jnp.float32),
         principles.astype(jnp.float32),
         jnp.zeros((PN - P, D), jnp.float32)], axis=0)            # (D + PN, D)
    b_fused = jnp.concatenate(
        [b1.astype(jnp.float32), jnp.zeros((PN,), jnp.float32)]).reshape(1, D + PN)
    inv_p = 1.0 / jnp.maximum(
        jnp.linalg.norm(principles.astype(jnp.float32), axis=-1), eps)
    inv_p_pad = jnp.concatenate(
        [inv_p, jnp.zeros((PN - P,), jnp.float32)]).reshape(1, PN)
    w2_row = w2.reshape(1, D).astype(jnp.float32)
    b2_s = b2.reshape(1).astype(jnp.float32)

    kernel = functools.partial(_ethical_kernel, num_principles=P)
    misc = pl.pallas_call(
        kernel,
        out_shape=jax.ShapeDtypeStruct((B, PN), jnp.float32),
        grid=(B // tb,),
        in_specs=[
            pl.BlockSpec((tb, D), lambda i: (i, 0)),          # x: tiled over batch
            pl.BlockSpec((D + PN, D), lambda i: (0, 0)),      # fused [W1 ; principles]
            pl.BlockSpec((1, D + PN), lambda i: (0, 0)),      # fused bias
            pl.BlockSpec((1, D), lambda i: (0, 0)),           # W2 row vector
            pl.BlockSpec((1, PN), lambda i: (0, 0)),          # 1 / ||p_i|| (padded)
            pl.BlockSpec(memory_space=pltpu.MemorySpace.SMEM),  # b2 scalar
        ],
        out_specs=pl.BlockSpec((tb, PN), lambda i: (i, 0)),   # lane-dense slab
        compiler_params=pltpu.CompilerParams(dimension_semantics=("parallel",)),
    )(x, fused_w, b_fused, w2_row, inv_p_pad, b2_s)

    cos = misc[:, :P]
    score = misc[:, P]
    # softmax over the singleton axis == 1.0 identically, so adjusted_x == x.
    adjusted_x = x
    return adjusted_x, score, cos


def _reference(x, principles, w1, b1, w2, b2):
    eps = 1e-8
    xf = x.astype(jnp.float32)
    pf = principles.astype(jnp.float32)
    dots = xf @ pf.T
    xn = jnp.maximum(jnp.linalg.norm(xf, axis=-1, keepdims=True), eps)
    pn = jnp.maximum(jnp.linalg.norm(pf, axis=-1, keepdims=True), eps)
    cos = dots / (xn * pn.T)
    h = jnp.maximum(xf @ w1.T + b1, 0.0)
    score = (h @ w2.T + b2)[:, 0]
    adj = xf * jax.nn.softmax(score[:, None], axis=1)   # softmax over singleton == 1
    return adj, score, cos


if __name__ == "__main__":
    # Small shapes consistent with the module: batch=16, dim=128, num_principles=10.
    B, D, P = 16, 128, 10

    key = jax.random.PRNGKey(0)
    k_x, k_p, k_w1, k_b1, k_w2, k_b2 = jax.random.split(key, 6)

    x = jax.random.normal(k_x, (B, D), dtype=jnp.float32)
    principles = jax.random.normal(k_p, (P, D), dtype=jnp.float32)   # nn.Parameter(randn(P, D))
    w1 = jax.random.normal(k_w1, (D, D), dtype=jnp.float32) * 0.05   # Linear(D, D).weight
    b1 = jax.random.normal(k_b1, (D,), dtype=jnp.float32) * 0.05     # Linear(D, D).bias
    w2 = jax.random.normal(k_w2, (1, D), dtype=jnp.float32) * 0.05   # Linear(D, 1).weight
    b2 = jax.random.normal(k_b2, (1,), dtype=jnp.float32) * 0.05     # Linear(D, 1).bias

    adj, score, cos = ethical_reasoning_forward(x, principles, w1, b1, w2, b2)
    jax.block_until_ready((adj, score, cos))

    # Sanity check against a pure-JAX reference.
    adj_ref, score_ref, cos_ref = _reference(x, principles, w1, b1, w2, b2)
    assert jnp.allclose(adj, adj_ref, atol=1e-5, rtol=1e-5)
    assert jnp.allclose(score, score_ref, atol=1e-4, rtol=1e-4)
    assert jnp.allclose(cos, cos_ref, atol=1e-4, rtol=1e-4)

    print("KERNEL_OK")
</pallas_src>

<mosaic_0001>
module attributes {stable_mosaic.version = 11 : i64} {
  func.func @_ethical_kernel(%arg0: i32, %arg1: memref<16x128xf32, #tpu.memory_space<vmem>>, %arg2: memref<256x128xf32, #tpu.memory_space<vmem>>, %arg3: memref<1x256xf32, #tpu.memory_space<vmem>>, %arg4: memref<1x128xf32, #tpu.memory_space<vmem>>, %arg5: memref<1x128xf32, #tpu.memory_space<vmem>>, %arg6: memref<1xf32, #tpu.memory_space<smem>>, %arg7: memref<16x128xf32, #tpu.memory_space<vmem>>) attributes {dimension_semantics = [#tpu.dimension_semantics<parallel>], iteration_bounds = array<i64: 1>, scalar_prefetch = 0 : i64, scratch_operands = 0 : i64, tpu.core_type = #tpu.core_type<tc>, window_params = [{transform_indices = @transform_0, window_bounds = array<i64: 16, 128>}, {pipeline_mode = #tpu.pipeline_mode<synchronous>, transform_indices = @transform_1, window_bounds = array<i64: 256, 128>}, {pipeline_mode = #tpu.pipeline_mode<synchronous>, transform_indices = @transform_2, window_bounds = array<i64: 1, 256>}, {pipeline_mode = #tpu.pipeline_mode<synchronous>, transform_indices = @transform_3, window_bounds = array<i64: 1, 128>}, {pipeline_mode = #tpu.pipeline_mode<synchronous>, transform_indices = @transform_4, window_bounds = array<i64: 1, 128>}, {transform_indices = @transform_5, window_bounds = array<i64: 1>}, {transform_indices = @transform_6, window_bounds = array<i64: 16, 128>}]} {
    %c0 = arith.constant 0 : index
    %c0_0 = arith.constant 0 : index
    %0 = vector.load %arg1[%c0, %c0_0] : memref<16x128xf32, #tpu.memory_space<vmem>>, vector<16x128xf32>
    %c0_1 = arith.constant 0 : index
    %c0_2 = arith.constant 0 : index
    %1 = vector.load %arg2[%c0_1, %c0_2] : memref<256x128xf32, #tpu.memory_space<vmem>>, vector<256x128xf32>
    %cst = arith.constant dense<0.000000e+00> : vector<16x256xf32>
    %2 = tpu.matmul %0, %1, %cst {dimension_numbers = #tpu.dot_dimension_numbers<[1], [1], [0], [0], [0, 0, 1, 0], [], []>} : vector<16x128xf32>, vector<256x128xf32>, vector<16x256xf32> -> vector<16x256xf32>
    %c0_3 = arith.constant 0 : index
    %c0_4 = arith.constant 0 : index
    %3 = vector.load %arg3[%c0_3, %c0_4] : memref<1x256xf32, #tpu.memory_space<vmem>>, vector<1x256xf32>
    %4 = vector.broadcast %3 : vector<1x256xf32> to vector<16x256xf32>
    %5 = arith.addf %2, %4 : vector<16x256xf32>
    %6 = vector.extract_strided_slice %5 {offsets = [0, 0], sizes = [16, 128], strides = [1, 1]} : vector<16x256xf32> to vector<16x128xf32>
    %cst_5 = arith.constant 0.000000e+00 : f32
    %7 = vector.broadcast %cst_5 : f32 to vector<16x128xf32>
    %8 = arith.maximumf %6, %7 : vector<16x128xf32>
    %c0_6 = arith.constant 0 : index
    %c0_7 = arith.constant 0 : index
    %9 = vector.load %arg4[%c0_6, %c0_7] : memref<1x128xf32, #tpu.memory_space<vmem>>, vector<1x128xf32>
    %10 = vector.broadcast %9 : vector<1x128xf32> to vector<16x128xf32>
    %11 = arith.mulf %8, %10 : vector<16x128xf32>
    %cst_8 = arith.constant dense<0.000000e+00> : vector<16xf32>
    %12 = vector.multi_reduction <add>, %11, %cst_8 [1] : vector<16x128xf32> to vector<16xf32>
    %13 = vector.shape_cast %12 : vector<16xf32> to vector<16x1xf32>
    %c0_9 = arith.constant 0 : index
    %14 = memref.load %arg6[%c0_9] : memref<1xf32, #tpu.memory_space<smem>>
    %15 = vector.broadcast %14 : f32 to vector<16x1xf32>
    %16 = arith.addf %13, %15 : vector<16x1xf32>
    %17 = arith.mulf %0, %0 : vector<16x128xf32>
    %cst_10 = arith.constant dense<0.000000e+00> : vector<16xf32>
    %18 = vector.multi_reduction <add>, %17, %cst_10 [1] : vector<16x128xf32> to vector<16xf32>
    %19 = vector.shape_cast %18 : vector<16xf32> to vector<16x1xf32>
    %20 = math.sqrt %19 : vector<16x1xf32>
    %cst_11 = arith.constant 9.99999993E-9 : f32
    %21 = vector.broadcast %cst_11 : f32 to vector<16x1xf32>
    %22 = arith.maximumf %20, %21 : vector<16x1xf32>
    %23 = tpu.reciprocal %22 : vector<16x1xf32> -> vector<16x1xf32>
    %24 = vector.extract_strided_slice %5 {offsets = [0, 128], sizes = [16, 128], strides = [1, 1]} : vector<16x256xf32> to vector<16x128xf32>
    %25 = vector.broadcast %23 : vector<16x1xf32> to vector<16x128xf32>
    %26 = arith.mulf %24, %25 : vector<16x128xf32>
    %c0_12 = arith.constant 0 : index
    %c0_13 = arith.constant 0 : index
    %27 = vector.load %arg5[%c0_12, %c0_13] : memref<1x128xf32, #tpu.memory_space<vmem>>, vector<1x128xf32>
    %28 = vector.broadcast %27 : vector<1x128xf32> to vector<16x128xf32>
    %29 = arith.mulf %26, %28 : vector<16x128xf32>
    %30 = tpu.iota {dimensions = array<i32: 1>} : vector<16x128xi32>
    %c10_i32 = arith.constant 10 : i32
    %31 = vector.broadcast %c10_i32 : i32 to vector<16x128xi32>
    %32 = arith.cmpi eq, %30, %31 : vector<16x128xi32>
    %33 = vector.shape_cast %16 : vector<16x1xf32> to vector<16x1xf32>
    %34 = vector.broadcast %33 : vector<16x1xf32> to vector<16x128xf32>
    %35 = arith.select %32, %34, %29 : vector<16x128xi1>, vector<16x128xf32>
    %c0_14 = arith.constant 0 : index
    %c0_15 = arith.constant 0 : index
    %36 = vector.load %arg7[%c0_14, %c0_15] : memref<16x128xf32, #tpu.memory_space<vmem>>, vector<16x128xf32>
    tpu.vector_store %arg7[%c0_14, %c0_15], %35 {strides = array<i32>} : memref<16x128xf32, #tpu.memory_space<vmem>>, vector<16x128xf32>,
    return
  }
  func.func @transform_0(%arg0: i32) -> (i32, i32) {
    %c0_i32 = arith.constant 0 : i32
    %c0_i32_0 = arith.constant 0 : i32
    return %arg0, %c0_i32 : i32, i32
  }
  func.func @transform_1(%arg0: i32) -> (i32, i32) {
    %c0_i32 = arith.constant 0 : i32
    %c0_i32_0 = arith.constant 0 : i32
    %c0_i32_1 = arith.constant 0 : i32
    return %c0_i32, %c0_i32_0 : i32, i32
  }
  func.func @transform_2(%arg0: i32) -> (i32, i32) {
    %c0_i32 = arith.constant 0 : i32
    %c0_i32_0 = arith.constant 0 : i32
    %c0_i32_1 = arith.constant 0 : i32
    return %c0_i32, %c0_i32_0 : i32, i32
  }
  func.func @transform_3(%arg0: i32) -> (i32, i32) {
    %c0_i32 = arith.constant 0 : i32
    %c0_i32_0 = arith.constant 0 : i32
    %c0_i32_1 = arith.constant 0 : i32
    return %c0_i32, %c0_i32_0 : i32, i32
  }
  func.func @transform_4(%arg0: i32) -> (i32, i32) {
    %c0_i32 = arith.constant 0 : i32
    %c0_i32_0 = arith.constant 0 : i32
    %c0_i32_1 = arith.constant 0 : i32
    return %c0_i32, %c0_i32_0 : i32, i32
  }
  func.func @transform_5(%arg0: i32) -> i32 {
    %c0_i32 = arith.constant 0 : i32
    %c0_i32_0 = arith.constant 0 : i32
    return %c0_i32 : i32
  }
  func.func @transform_6(%arg0: i32) -> (i32, i32) {
    %c0_i32 = arith.constant 0 : i32
    %c0_i32_0 = arith.constant 0 : i32
    return %arg0, %c0_i32 : i32, i32
  }
}

</mosaic_0001>

<bundles_post_ra>
// kernel: ethical_reasoning_forward.1
= control target key start
LH: loop header
LB: loop body
LE: loop exit
PB: predicated region body
PF: predicated region fallthrough
CT: control target
= control target key end

     0   :  { %v60_v52 = vlaneseq  ;;  %s473_s1 = inlined_call_operand.vmem [shape: f32[256,128], index: 1, kind: input, shape index: {}]   ;;  %s474_s0 = inlined_call_operand.vmem [shape: f32[16,128], index: 0, kind: input, shape index: {}]   ;;  %s475_s2 = inlined_call_operand.vmem [shape: f32[1,256], index: 2, kind: input, shape index: {}]   ;;  %s476_s3 = inlined_call_operand.vmem [shape: f32[1,128], index: 3, kind: input, shape index: {}]   ;;  %s477_s4 = inlined_call_operand.vmem [shape: f32[1,128], index: 4, kind: input, shape index: {}]   ;;  %s478_s5 = inlined_call_operand.<no memory space> [shape: f32[1], index: 5, kind: input, shape index: {}]   ;;  %s479_s6 = inlined_call_operand.vmem [shape: f32[16,128], index: 6, kind: output, shape index: {}]  }
   0x1   :  { %v42_v0 = vld [vmem:[%s473_s1 + $0x80] sm:$0xff]  ;;  %v43_v1 = vld [vmem:[%s473_s1 + $0x88] sm:$0xff]  ;;  %v44_v5 = vld [vmem:[%s473_s1 + $0x90] sm:$0xff] }
   0x2   :  { %v26_v2 = vld [vmem:[%s473_s1] sm:$0xff]  ;;  %v250_v3 = vpack.c.bf16 %v43_v1, %v42_v0  ;;  %v27_v4 = vld [vmem:[%s473_s1 + $0x8] sm:$0xff]  ;;  %v45_v6 = vld [vmem:[%s473_s1 + $0x98] sm:$0xff]  ;;  %v61_v53 = vshrl.u32 %v60_v52, 7 }
   0x3   :  { %v252_v7 = vpack.c.bf16 %v27_v4, %v26_v2  ;;  %v254_v8 = vpack.c.bf16 %v45_v6, %v44_v5  ;;  %v28_v9 = vld [vmem:[%s473_s1 + $0x10] sm:$0xff]  ;;  %v29_v10 = vld [vmem:[%s473_s1 + $0x18] sm:$0xff]  ;;  %v46_v11 = vld [vmem:[%s473_s1 + $0xa0] sm:$0xff] }
   0x4   :  { %251 = vmatprep.subr.bf16.mxu0 %v250_v3  ;;  %282 = vmatprep.subr.bf16.mxu1 %v250_v3  ;;  %v47_v12 = vld [vmem:[%s473_s1 + $0xa8] sm:$0xff]  ;;  %v256_v13 = vpack.c.bf16 %v29_v10, %v28_v9  ;;  %v374_v15 = vld [vmem:[%s474_s0] sm:$0xff]  ;;  %v48_v20 = vld [vmem:[%s473_s1 + $0xb0] sm:$0xff]  ;;  %v62_v54 = vsub.s32 0, %v61_v53 }
   0x5   :  { %253 = vmatpush3.bf16.xpose.msra.mxu0 %v252_v7  ;;  %290 = vmatpush3.bf16.xpose.msra.mxu1 %v252_v7  ;;  %v258_v14 = vpack.c.bf16 %v47_v12, %v46_v11  ;;  %v380_v16 = vld [vmem:[%s474_s0 + $0x8] sm:$0xff]  ;;  %v166_v17 = vmul.f32 %v374_v15, %v374_v15  ;;  %v30_v18 = vld [vmem:[%s473_s1 + $0x20] sm:$0xff]  ;;  %v49_v21 = vld [vmem:[%s473_s1 + $0xb8] sm:$0xff] }
   0x6   :  { %255 = vmatprep.subr.bf16.mxu0 %v254_v8  ;;  %283 = vmatprep.subr.bf16.mxu1 %v254_v8  ;;  %v31_v19 = vld [vmem:[%s473_s1 + $0x28] sm:$0xff]  ;;  %v167_v22 = vmul.f32 %v380_v16, %v380_v16  ;;  %v262_v24 = vpack.c.bf16 %v49_v21, %v48_v20  ;;  %v32_v25 = vld [vmem:[%s473_s1 + $0x30] sm:$0xff]  ;;  %v33_v26 = vld [vmem:[%s473_s1 + $0x38] sm:$0xff] }
   0x7   :  { %246 = vmatprep.mubr.f32.mxu0 %v374_v15  ;;  %248 = vmatprep.mubr.f32.mxu1 %v380_v16  ;;  %v260_v23 = vpack.c.bf16 %v31_v19, %v30_v18  ;;  %v50_v27 = vld [vmem:[%s473_s1 + $0xc0] sm:$0xff]  ;;  %v51_v28 = vld [vmem:[%s473_s1 + $0xc8] sm:$0xff]  ;;  %v264_v29 = vpack.c.bf16 %v33_v26, %v32_v25  ;;  %v52_v33 = vld [vmem:[%s473_s1 + $0xd0] sm:$0xff]  ;;  %v66_v18 = vsub.s32 1, %v61_v53 }
   0x8   :  { %168 = vadd.xlane.f32.xlu0 %v166_v17  ;;  %v266_v30 = vpack.c.bf16 %v51_v28, %v50_v27  ;;  %v34_v31 = vld [vmem:[%s473_s1 + $0x40] sm:$0xff]  ;;  %v35_v32 = vld [vmem:[%s473_s1 + $0x48] sm:$0xff]  ;;  %v53_v34 = vld [vmem:[%s473_s1 + $0xd8] sm:$0xff]  ;;  %v163_v27 = vstv %s478_s5 }
   0x9   :  { %v268_v35 = vpack.c.bf16 %v35_v32, %v34_v31  ;;  %v270_v36 = vpack.c.bf16 %v53_v34, %v52_v33  ;;  %v36_v37 = vld [vmem:[%s473_s1 + $0x50] sm:$0xff]  ;;  %v37_v38 = vld [vmem:[%s473_s1 + $0x58] sm:$0xff]  ;;  %v54_v39 = vld [vmem:[%s473_s1 + $0xe0] sm:$0xff] }
   0xa   :  { %v55_v40 = vld [vmem:[%s473_s1 + $0xe8] sm:$0xff]  ;;  %v272_v41 = vpack.c.bf16 %v37_v38, %v36_v37  ;;  %v38_v43 = vld [vmem:[%s473_s1 + $0x60] sm:$0xff]  ;;  %v56_v45 = vld [vmem:[%s473_s1 + $0xf0] sm:$0xff] }
   0xb   :  { %v274_v42 = vpack.c.bf16 %v55_v40, %v54_v39  ;;  %v39_v44 = vld [vmem:[%s473_s1 + $0x68] sm:$0xff]  ;;  %v57_v46 = vld [vmem:[%s473_s1 + $0xf8] sm:$0xff]  ;;  %v40_v49 = vld [vmem:[%s473_s1 + $0x70] sm:$0xff] }
   0xc   :  { %170 = vadd.xlane.f32.xlu0 %v167_v22  ;;  %v276_v47 = vpack.c.bf16 %v39_v44, %v38_v43  ;;  %v278_v48 = vpack.c.bf16 %v57_v46, %v56_v45  ;;  %v41_v50 = vld [vmem:[%s473_s1 + $0x78] sm:$0xff]  ;;  %v58_v55 = vld [vmem:[%s475_s2] sm:$0x3]  ;;  %v202_v22 = vand.u32 127, %v60_v52 }
   0xd   :  { %257 = vmatpush3.bf16.xpose.msra.mxu0 %v256_v13  ;;  %291 = vmatpush3.bf16.xpose.msra.mxu1 %v256_v13  ;;  %v280_v51 = vpack.c.bf16 %v41_v50, %v40_v49  ;;  %v63_v56 = vrot.slane %v58_v55, %v62_v54  ;;  %v212_v63 = vld [vmem:[%s476_s3] ss:$0 sm:$0xff]  ;;  %v67_v19 = vrot.slane %v58_v55, %v66_v18 }
   0xe   :  { %259 = vmatprep.subr.bf16.mxu0 %v258_v14  ;;  %284 = vmatprep.subr.bf16.mxu1 %v258_v14  ;;  %v213_v26 = vld [vmem:[%s477_s4] ss:$0 sm:$0xff]  ;;  %vm203_vm4 = vcmp.eq.s32.totalorder %v202_v22, 10 }
  0x15   :  { %261 = vmatpush3.bf16.xpose.msra.mxu0 %v260_v23  ;;  %292 = vmatpush3.bf16.xpose.msra.mxu1 %v260_v23 }
  0x16   :  { %263 = vmatprep.subr.bf16.mxu0 %v262_v24  ;;  %285 = vmatprep.subr.bf16.mxu1 %v262_v24 }
  0x1d   :  { %265 = vmatpush3.bf16.xpose.msra.mxu0 %v264_v29  ;;  %293 = vmatpush3.bf16.xpose.msra.mxu1 %v264_v29 }
  0x1e   :  { %267 = vmatprep.subr.bf16.mxu0 %v266_v30  ;;  %286 = vmatprep.subr.bf16.mxu1 %v266_v30 }
  0x25   :  { %269 = vmatpush3.bf16.xpose.msra.mxu0 %v268_v35  ;;  %294 = vmatpush3.bf16.xpose.msra.mxu1 %v268_v35 }
  0x26   :  { %271 = vmatprep.subr.bf16.mxu0 %v270_v36  ;;  %287 = vmatprep.subr.bf16.mxu1 %v270_v36 }
  0x2d   :  { %273 = vmatpush3.bf16.xpose.msra.mxu0 %v272_v41  ;;  %295 = vmatpush3.bf16.xpose.msra.mxu1 %v272_v41 }
  0x2e   :  { %275 = vmatprep.subr.bf16.mxu0 %v274_v42  ;;  %288 = vmatprep.subr.bf16.mxu1 %v274_v42 }
  0x35   :  { %277 = vmatpush3.bf16.xpose.msra.mxu0 %v276_v47  ;;  %296 = vmatpush3.bf16.xpose.msra.mxu1 %v276_v47 }
  0x36   :  { %279 = vmatprep.subr.bf16.mxu0 %v278_v48  ;;  %289 = vmatprep.subr.bf16.mxu1 %v278_v48 }
  0x3d   :  { %281 = vmatpush3.bf16.xpose.msra.mxu0 %v280_v51  ;;  %297 = vmatpush3.bf16.xpose.msra.mxu1 %v280_v51 }
  0x44   :  { %247 = vmatmul.mubr.f32.vlgmr.msra.gmra.mrb[0].mxu0 %v374_v15  ;;  %249 = vmatmul.mubr.f32.vlgmr.msra.gmra.mrb[0].mxu1 %v380_v16 }
  0x95   :  { %v169_v4 = vpop.xlane.xlu0 %168 }
  0x96   :  { %298 = vrsqrt.f32 %v169_v4  ;;  %vm174_vm0 = vcmp.eq.f32.partialorder %v169_v4, inf  ;;  %v177_v9 = vand.u32 2147483648, %v169_v4  ;;  %vm176_vm1 = vcmp.eq.f32.partialorder %v169_v4, 0.0 }
  0x99   :  { %v171_v5 = vpop.xlane.xlu0 %170 }
  0x9a   :  { %300 = vrsqrt.f32 %v171_v5  ;;  %vm181_vm2 = vcmp.eq.f32.partialorder %v171_v5, inf  ;;  %v184_v13 = vand.u32 2147483648, %v171_v5  ;;  %vm183_vm3 = vcmp.eq.f32.partialorder %v171_v5, 0.0 }
  0xa0   :  { %v299_v6 = vpop.eup %298 }
  0xa1   :  { %v173_v7 = vmul.f32 %v299_v6, %v169_v4 }
  0xa3   :  { %v175_v10 = vsel %vm174_vm0, %v169_v4, %v173_v7 }
  0xa4   :  { %v301_v8 = vpop.eup %300  ;;  %v178_v12 = vsel %vm176_vm1, %v177_v9, %v175_v10 }
  0xa5   :  { %v180_v11 = vmul.f32 %v301_v8, %v171_v5  ;;  %v186_v15 = vmax.f32 %v178_v12, 1e-08 }
  0xa7   :  { %v182_v14 = vsel %vm181_vm2, %v171_v5, %v180_v11  ;;  %302 = vrcp.f32 %v186_v15 }
  0xa8   :  { %v185_v16 = vsel %vm183_vm3, %v184_v13, %v182_v14 }
  0xa9   :  { %v187_v17 = vmax.f32 %v185_v16, 1e-08 }
  0xab   :  { %304 = vrcp.f32 %v187_v17 }
  0xb1   :  { %v303_v21 = vpop.eup %302 }
  0xb5   :  { %v305_v25 = vpop.eup %304 }
 0x117   :  { %v136_v57 = vpop.f32.mrb[0].mxu0  ;;  %v142_v58 = vpop.f32.mrb[0].mxu1 }
 0x118   :  { %v137_v59 = vadd.f32 %v136_v57, %v63_v56  ;;  %v138_v60 = vpop.f32.mrb[1].mxu0  ;;  %v143_v61 = vadd.f32 %v142_v58, %v63_v56  ;;  %v144_v62 = vpop.f32.mrb[1].mxu1 }
 0x119   :  { %v139_v20 = vadd.f32 %v138_v60, %v67_v19  ;;  %v145_v24 = vadd.f32 %v144_v62, %v67_v19 }
 0x11a   :  { %v147_v0 = vmax.f32 %v137_v59, 0.0  ;;  %v148_v1 = vmax.f32 %v143_v61, 0.0 }
 0x11b   :  { %v190_v23 = vmul.f32 %v303_v21, %v139_v20  ;;  %v191_v30 = vmul.f32 %v305_v25, %v145_v24 }
 0x11c   :  { %v156_v2 = vmul.f32 %v212_v63, %v147_v0  ;;  %v157_v3 = vmul.f32 %v212_v63, %v148_v1 }
 0x11d   :  { %v199_v29 = vmul.f32 %v213_v26, %v190_v23  ;;  %v200_v34 = vmul.f32 %v213_v26, %v191_v30 }
 0x11e   :  { %158 = vadd.xlane.f32.xlu1 %v156_v2 }
 0x122   :  { %160 = vadd.xlane.f32.xlu1 %v157_v3 }
 0x1ab   :  { %v159_v28 = vpop.xlane.xlu1 %158 }
 0x1ac   :  { %v164_v31 = vadd.f32 %v163_v27, %v159_v28 }
 0x1ae   :  { %v204_v32 = vsel %vm203_vm4, %v164_v31, %v199_v29 }
 0x1af   :  { %206 = vst [vmem:[%s479_s6] sm:$0xff] %v204_v32  ;;  %v161_v33 = vpop.xlane.xlu1 %160 }
 0x1b0   :  { %v165_v35 = vadd.f32 %v163_v27, %v161_v33 }
 0x1b2   :  { %v205_v36 = vsel %vm203_vm4, %v165_v35, %v200_v34 }
 0x1b3   :  { %207 = vst [vmem:[%s479_s6 + $0x8] sm:$0xff] %v205_v36 }

</bundles_post_ra>
